<compile_context>
chip_gen: v7x
topology: tpu7x:2x2x1
jax: 0.10.0
libtpu: 0.0.40
codegen_flags: <defaults>
</compile_context>

<pallas_src>
import math

import jax
import jax.numpy as jnp
from jax.experimental import pallas as pl
from jax.experimental.pallas import tpu as pltpu


# ---------------- module hyper-parameters (match the PyTorch __init__) -------
BIN_COUNT = 10
LENGTH = BIN_COUNT + 1
MIN_V = 0.0
MAX_V = 1.0
SCALE = float(MAX_V - MIN_V)
REG_SCALE = 2.0
STEP = SCALE / BIN_COUNT
USE_FW_REGRESSION = True

# bins[i] = start + step * i  (same values torch.range produces)
_START = MIN_V + SCALE / 2.0 / BIN_COUNT
BINS = (_START + STEP * jnp.arange(BIN_COUNT, dtype=jnp.float32)).astype(jnp.float32)


def _round_up(x, m):
    return ((x + m - 1) // m) * m


# ------------------------------- Pallas kernel -------------------------------
def _make_sigmoid_bin_kernel(chunk, n_chunks, unroll, use_einshape):
    """Kernel factory; all arguments are static Python ints / bools."""

    def relayout(x):
        # rows-on-sublanes (chunk, L)  ->  rows-on-lanes (L, chunk)
        if use_einshape:
            return pltpu.einshape("rc->cr", x)
        return jnp.transpose(x)

    def kernel(pred_ref, out_ref):
        # pred_ref: (TN, LENGTH) caller dtype, rows on sublanes.
        # out_ref : (1, 1, TN)  float32, rows on lanes (lane-dense store).

        def body(c, carry):
            r0 = pl.multiple_of(c * chunk, chunk)

            # Load a chunk and upcast in-kernel (free VPU op; avoids a wrapper
            # side f32 copy in HBM when the caller passes bf16/fp16).
            x = pred_ref[pl.ds(r0, chunk), :].astype(jnp.float32)   # (chunk, L)

            # ONE relayout per chunk -> rows on lanes; all arithmetic below
            # runs on dense vregs and the per-row result comes out lane-dense
            # for an unmasked vst + dense writeback DMA.
            xt = relayout(x)                                        # (L, chunk)

            reg_row = xt[0:1, :]                                    # (1, chunk)
            pred_bin = xt[1:1 + BIN_COUNT, :]                       # (BIN_COUNT, chunk)

            # argmax over the bin (sublane) axis, first-maximal-index tie rule
            # to match torch.max.  NOTE: a NaN bin yields a clipped finite
            # value instead of propagating NaN (differs from torch; measure
            # zero for real workloads).
            max_val = jnp.max(pred_bin, axis=0, keepdims=True)      # (1, chunk)
            bin_iota = jax.lax.broadcasted_iota(
                jnp.int32, pred_bin.shape, 0).astype(jnp.float32)   # (BIN_COUNT, chunk)
            first_idx = jnp.min(
                jnp.where(pred_bin == max_val, bin_iota, float(BIN_COUNT)),
                axis=0, keepdims=True)                              # (1, chunk)

            # bins is affine in the index: bins[i] = start + step*i
            # -> no gather, no bins input stream.
            bin_bias = _START + STEP * first_idx                    # (1, chunk)
            pred_reg = (reg_row * REG_SCALE - REG_SCALE / 2.0) * STEP

            if USE_FW_REGRESSION:
                result = pred_reg + bin_bias
            else:
                result = bin_bias
            result = jnp.clip(result, MIN_V, MAX_V)                 # (1, chunk)

            out_ref[:, :, pl.ds(r0, chunk)] = (
                result.reshape(1, 1, chunk).astype(out_ref.dtype))
            return carry

        # Small unroll so adjacent chunks' loads / XLU pushes / stores overlap
        # across VLIW slots.
        jax.lax.fori_loop(0, n_chunks, body, 0, unroll=unroll)

    return kernel


def _build_call(*, tn, num_blocks, chunk, n_chunks, unroll, vmem_limit,
                use_einshape, itemsize):
    return pl.pallas_call(
        _make_sigmoid_bin_kernel(chunk, n_chunks, unroll, use_einshape),
        out_shape=jax.ShapeDtypeStruct((num_blocks, 1, tn), jnp.float32),
        grid_spec=pltpu.PrefetchScalarGridSpec(
            num_scalar_prefetch=0,
            grid=(num_blocks,),
            in_specs=[
                pl.BlockSpec((tn, LENGTH), lambda i: (i, 0)),
            ],
            # Lane-dense output: last two block dims (1, tn) equal the full
            # array dims; tn is a multiple of 128 -> unmasked vst + dense DMA.
            out_specs=pl.BlockSpec((1, 1, tn), lambda i: (i, 0, 0)),
        ),
        compiler_params=pltpu.CompilerParams(
            dimension_semantics=("parallel",),
            vmem_limit_bytes=vmem_limit),
        cost_estimate=pl.CostEstimate(
            flops=60 * num_blocks * tn,
            transcendentals=0,
            bytes_accessed=num_blocks * tn * (LENGTH * itemsize + 4)),
    )


# --------------------------------- wrapper -----------------------------------
_RELAYOUT_MODE = ["einshape"]   # flips to "transpose" if einshape fails to lower


def sigmoid_bin_forward(pred, *, tile_n=8192):
    assert pred.shape[-1] == LENGTH, (
        "pred.shape[-1]=%d is not equal to length=%d" % (pred.shape[-1], LENGTH))
    lead_shape = pred.shape[:-1]
    n = int(math.prod(lead_shape))

    # Keep the caller's dtype (no wrapper-side cast); reshape is a free view.
    pred2d = pred.reshape(n, LENGTH)

    # ---- row-tile selection (no input copy for large n) ----------------------
    if n < 1024:
        # Tiny problem: a pad copy is at most a few KiB -> negligible, and it
        # keeps the single block fully in-bounds.
        tn = _round_up(n, 128)
        if tn != n:
            pred2d = jnp.pad(pred2d, ((0, tn - n), (0, 0)))
        num_blocks = 1
    else:
        # Large problem: NEVER copy the input.  tn is a 128-multiple <= n, so
        # the last grid step is an ordinary partial block: OOB tail rows read
        # don't-care data and their outputs are sliced off below (rows are
        # independent, so this is safe -- do not add cross-row reductions).
        tn = min(_round_up(tile_n, 128), (n // 128) * 128)
        num_blocks = pl.cdiv(n, tn)
        # Megacore (v7x) gate: only split a single block when each core gets
        # >= 4096 rows of real work; on v5e/v6e the grid is a serial loop and
        # an extra step is pure overhead.
        if num_blocks == 1 and n >= 8192:
            tn = _round_up(pl.cdiv(n, 2), 128)
            num_blocks = pl.cdiv(n, tn)

    # In-kernel sub-tile: bounds vreg pressure for large TN.
    chunk = 256 if tn % 256 == 0 else 128
    n_chunks = tn // chunk
    unroll = 4 if n_chunks % 4 == 0 else (2 if n_chunks % 2 == 0 else 1)

    # Explicit VMEM budget: the (tn, 11) input tile is lane-padded to 128 in
    # VMEM and double-buffered; 2x headroom, capped at 48 MiB (valid on
    # v5e/v6e/v7x physical VMEM).
    itemsize = pred2d.dtype.itemsize
    vmem_need = 2 * (tn * 128 * itemsize) + 2 * (tn * 8 * 4)
    vmem_limit = int(min(max(2 * vmem_need, 32 * 1024 * 1024), 48 * 1024 * 1024))

    def run(use_einshape):
        call = _build_call(tn=tn, num_blocks=num_blocks, chunk=chunk,
                           n_chunks=n_chunks, unroll=unroll,
                           vmem_limit=vmem_limit, use_einshape=use_einshape,
                           itemsize=itemsize)
        return jax.block_until_ready(call(pred2d))

    if _RELAYOUT_MODE[0] == "einshape":
        try:
            out = run(True)
        except Exception:
            # Mosaic rejected the 11-minor einshape relayout on this chip /
            # jax version; fall back to the plain transpose lowering (same
            # structure, known-good).
            _RELAYOUT_MODE[0] = "transpose"
            out = run(False)
    else:
        out = run(False)

    n_total = num_blocks * tn
    return out.reshape(n_total)[:n].reshape(lead_shape)


# ------------------------------ reference (JAX) -------------------------------
def sigmoid_bin_forward_ref(pred):
    pred = pred.astype(jnp.float32)
    pred_reg = (pred[..., 0] * REG_SCALE - REG_SCALE / 2.0) * STEP
    pred_bin = pred[..., 1:1 + BIN_COUNT]
    bin_idx = jnp.argmax(pred_bin, axis=-1)
    bin_bias = BINS[bin_idx]
    result = pred_reg + bin_bias if USE_FW_REGRESSION else bin_bias
    return jnp.clip(result, MIN_V, MAX_V)


if __name__ == "__main__":
    key = jax.random.PRNGKey(0)
    k1, k2, k3 = jax.random.split(key, 3)

    # Case 1: small, single block (batch=2, anchors=64, length=11) -> n=128.
    pred1 = jax.random.normal(k1, (2, 64, LENGTH), dtype=jnp.float32)
    out1 = jax.block_until_ready(sigmoid_bin_forward(pred1))
    ref1 = sigmoid_bin_forward_ref(pred1)
    assert out1.shape == ref1.shape == (2, 64)
    assert jnp.allclose(out1, ref1, atol=1e-6, rtol=1e-6), (
        "case1 mismatch: %s" % jnp.max(jnp.abs(out1 - ref1)))

    # Case 2: n=1200 -> no-pad path, 2 grid steps, partial last input block.
    pred2 = jax.random.normal(k2, (2, 600, LENGTH), dtype=jnp.float32)
    out2 = jax.block_until_ready(sigmoid_bin_forward(pred2))
    ref2 = sigmoid_bin_forward_ref(pred2)
    assert out2.shape == ref2.shape == (2, 600)
    assert jnp.allclose(out2, ref2, atol=1e-6, rtol=1e-6), (
        "case2 mismatch: %s" % jnp.max(jnp.abs(out2 - ref2)))

    # Case 3: n=9000 -> one full 8192-row block + partial tail block,
    # 256-row chunks, unrolled inner loop.
    pred3 = jax.random.normal(k3, (3, 3000, LENGTH), dtype=jnp.float32)
    out3 = jax.block_until_ready(sigmoid_bin_forward(pred3))
    ref3 = sigmoid_bin_forward_ref(pred3)
    assert out3.shape == ref3.shape == (3, 3000)
    assert jnp.allclose(out3, ref3, atol=1e-6, rtol=1e-6), (
        "case3 mismatch: %s" % jnp.max(jnp.abs(out3 - ref3)))

    print("KERNEL_OK")
</pallas_src>

<mosaic_0001>
module attributes {stable_mosaic.version = 11 : i64} {
  func.func @kernel(%arg0: i32, %arg1: memref<128x11xf32, #tpu.memory_space<vmem>>, %arg2: memref<1x1x128xf32, #tpu.memory_space<vmem>>) attributes {dimension_semantics = [#tpu.dimension_semantics<parallel>], iteration_bounds = array<i64: 1>, scalar_prefetch = 0 : i64, scratch_operands = 0 : i64, tpu.core_type = #tpu.core_type<tc>, window_params = [{transform_indices = @transform_0, window_bounds = array<i64: 128, 11>}, {transform_indices = @transform_1, window_bounds = array<i64: 1, 1, 128>}]} {
    %c0_i32 = arith.constant 0 : i32
    %c128_i32 = arith.constant 128 : i32
    %0 = arith.muli %c0_i32, %c128_i32 : i32
    %1 = tpu.assume_multiple %0, 128 : i32
    %2 = arith.index_cast %1 : i32 to index
    %c0 = arith.constant 0 : index
    %3 = vector.load %arg1[%2, %c0] : memref<128x11xf32, #tpu.memory_space<vmem>>, vector<128x11xf32>
    %4 = tpu.transpose %3, [1, 0] : vector<128x11xf32> -> vector<11x128xf32>
    %5 = vector.extract_strided_slice %4 {offsets = [0, 0], sizes = [1, 128], strides = [1, 1]} : vector<11x128xf32> to vector<1x128xf32>
    %6 = vector.extract_strided_slice %4 {offsets = [1, 0], sizes = [10, 128], strides = [1, 1]} : vector<11x128xf32> to vector<10x128xf32>
    %cst = arith.constant dense<0xFF800000> : vector<128xf32>
    %7 = vector.multi_reduction <maximumf>, %6, %cst [0] : vector<10x128xf32> to vector<128xf32>
    %8 = vector.shape_cast %7 : vector<128xf32> to vector<1x128xf32>
    %9 = tpu.iota {dimensions = array<i32: 0>} : vector<10x128xi32>
    %10 = arith.sitofp %9 : vector<10x128xi32> to vector<10x128xf32>
    %11 = vector.broadcast %8 : vector<1x128xf32> to vector<10x128xf32>
    %12 = arith.cmpf oeq, %6, %11 : vector<10x128xf32>
    %cst_0 = arith.constant 1.000000e+01 : f32
    %13 = vector.broadcast %cst_0 : f32 to vector<10x128xf32>
    %14 = arith.select %12, %10, %13 : vector<10x128xi1>, vector<10x128xf32>
    %cst_1 = arith.constant dense<0x7F800000> : vector<128xf32>
    %15 = vector.multi_reduction <minimumf>, %14, %cst_1 [0] : vector<10x128xf32> to vector<128xf32>
    %16 = vector.shape_cast %15 : vector<128xf32> to vector<1x128xf32>
    %cst_2 = arith.constant 1.000000e-01 : f32
    %17 = vector.broadcast %cst_2 : f32 to vector<1x128xf32>
    %18 = arith.mulf %17, %16 : vector<1x128xf32>
    %cst_3 = arith.constant 5.000000e-02 : f32
    %19 = vector.broadcast %cst_3 : f32 to vector<1x128xf32>
    %20 = arith.addf %19, %18 : vector<1x128xf32>
    %cst_4 = arith.constant 2.000000e+00 : f32
    %21 = vector.broadcast %cst_4 : f32 to vector<1x128xf32>
    %22 = arith.mulf %5, %21 : vector<1x128xf32>
    %cst_5 = arith.constant 1.000000e+00 : f32
    %23 = vector.broadcast %cst_5 : f32 to vector<1x128xf32>
    %24 = arith.subf %22, %23 : vector<1x128xf32>
    %cst_6 = arith.constant 1.000000e-01 : f32
    %25 = vector.broadcast %cst_6 : f32 to vector<1x128xf32>
    %26 = arith.mulf %24, %25 : vector<1x128xf32>
    %27 = arith.addf %26, %20 : vector<1x128xf32>
    %cst_7 = arith.constant 0.000000e+00 : f32
    %cst_8 = arith.constant 1.000000e+00 : f32
    %28 = vector.broadcast %cst_7 : f32 to vector<1x128xf32>
    %29 = arith.maximumf %28, %27 : vector<1x128xf32>
    %30 = vector.broadcast %cst_8 : f32 to vector<1x128xf32>
    %31 = arith.minimumf %30, %29 : vector<1x128xf32>
    %32 = vector.shape_cast %31 : vector<1x128xf32> to vector<1x1x128xf32>
    %c0_9 = arith.constant 0 : index
    %c0_10 = arith.constant 0 : index
    %33 = arith.index_cast %1 : i32 to index
    %34 = vector.load %arg2[%c0_9, %c0_10, %33] : memref<1x1x128xf32, #tpu.memory_space<vmem>>, vector<1x1x128xf32>
    tpu.vector_store %arg2[%c0_9, %c0_10, %33], %32 {strides = array<i32>} : memref<1x1x128xf32, #tpu.memory_space<vmem>>, vector<1x1x128xf32>,
    %c1_i32 = arith.constant 1 : i32
    return
  }
  func.func @transform_0(%arg0: i32) -> (i32, i32) {
    %c0_i32 = arith.constant 0 : i32
    %c0_i32_0 = arith.constant 0 : i32
    return %arg0, %c0_i32 : i32, i32
  }
  func.func @transform_1(%arg0: i32) -> (i32, i32, i32) {
    %c0_i32 = arith.constant 0 : i32
    %c0_i32_0 = arith.constant 0 : i32
    %c0_i32_1 = arith.constant 0 : i32
    return %arg0, %c0_i32, %c0_i32_0 : i32, i32, i32
  }
}

module attributes {stable_mosaic.version = 11 : i64} {
  func.func @kernel(%arg0: i32, %arg1: memref<128x11xf32, #tpu.memory_space<vmem>>, %arg2: memref<1x1x128xf32, #tpu.memory_space<vmem>>) attributes {dimension_semantics = [#tpu.dimension_semantics<parallel>], iteration_bounds = array<i64: 1>, scalar_prefetch = 0 : i64, scratch_operands = 0 : i64, tpu.core_type = #tpu.core_type<tc>, window_params = [{transform_indices = @transform_0, window_bounds = array<i64: 128, 11>}, {transform_indices = @transform_1, window_bounds = array<i64: 1, 1, 128>}]} {
    %c0_i32 = arith.constant 0 : i32
    %c128_i32 = arith.constant 128 : i32
    %0 = arith.muli %c0_i32, %c128_i32 : i32
    %1 = tpu.assume_multiple %0, 128 : i32
    %2 = arith.index_cast %1 : i32 to index
    %c0 = arith.constant 0 : index
    %3 = vector.load %arg1[%2, %c0] : memref<128x11xf32, #tpu.memory_space<vmem>>, vector<128x11xf32>
    %4 = tpu.transpose %3, [1, 0] : vector<128x11xf32> -> vector<11x128xf32>
    %5 = vector.extract_strided_slice %4 {offsets = [0, 0], sizes = [1, 128], strides = [1, 1]} : vector<11x128xf32> to vector<1x128xf32>
    %6 = vector.extract_strided_slice %4 {offsets = [1, 0], sizes = [10, 128], strides = [1, 1]} : vector<11x128xf32> to vector<10x128xf32>
    %cst = arith.constant dense<0xFF800000> : vector<128xf32>
    %7 = vector.multi_reduction <maximumf>, %6, %cst [0] : vector<10x128xf32> to vector<128xf32>
    %8 = vector.shape_cast %7 : vector<128xf32> to vector<1x128xf32>
    %9 = tpu.iota {dimensions = array<i32: 0>} : vector<10x128xi32>
    %10 = arith.sitofp %9 : vector<10x128xi32> to vector<10x128xf32>
    %11 = vector.broadcast %8 : vector<1x128xf32> to vector<10x128xf32>
    %12 = arith.cmpf oeq, %6, %11 : vector<10x128xf32>
    %cst_0 = arith.constant 1.000000e+01 : f32
    %13 = vector.broadcast %cst_0 : f32 to vector<10x128xf32>
    %14 = arith.select %12, %10, %13 : vector<10x128xi1>, vector<10x128xf32>
    %cst_1 = arith.constant dense<0x7F800000> : vector<128xf32>
    %15 = vector.multi_reduction <minimumf>, %14, %cst_1 [0] : vector<10x128xf32> to vector<128xf32>
    %16 = vector.shape_cast %15 : vector<128xf32> to vector<1x128xf32>
    %cst_2 = arith.constant 1.000000e-01 : f32
    %17 = vector.broadcast %cst_2 : f32 to vector<1x128xf32>
    %18 = arith.mulf %17, %16 : vector<1x128xf32>
    %cst_3 = arith.constant 5.000000e-02 : f32
    %19 = vector.broadcast %cst_3 : f32 to vector<1x128xf32>
    %20 = arith.addf %19, %18 : vector<1x128xf32>
    %cst_4 = arith.constant 2.000000e+00 : f32
    %21 = vector.broadcast %cst_4 : f32 to vector<1x128xf32>
    %22 = arith.mulf %5, %21 : vector<1x128xf32>
    %cst_5 = arith.constant 1.000000e+00 : f32
    %23 = vector.broadcast %cst_5 : f32 to vector<1x128xf32>
    %24 = arith.subf %22, %23 : vector<1x128xf32>
    %cst_6 = arith.constant 1.000000e-01 : f32
    %25 = vector.broadcast %cst_6 : f32 to vector<1x128xf32>
    %26 = arith.mulf %24, %25 : vector<1x128xf32>
    %27 = arith.addf %26, %20 : vector<1x128xf32>
    %cst_7 = arith.constant 0.000000e+00 : f32
    %cst_8 = arith.constant 1.000000e+00 : f32
    %28 = vector.broadcast %cst_7 : f32 to vector<1x128xf32>
    %29 = arith.maximumf %28, %27 : vector<1x128xf32>
    %30 = vector.broadcast %cst_8 : f32 to vector<1x128xf32>
    %31 = arith.minimumf %30, %29 : vector<1x128xf32>
    %32 = vector.shape_cast %31 : vector<1x128xf32> to vector<1x1x128xf32>
    %c0_9 = arith.constant 0 : index
    %c0_10 = arith.constant 0 : index
    %33 = arith.index_cast %1 : i32 to index
    %34 = vector.load %arg2[%c0_9, %c0_10, %33] : memref<1x1x128xf32, #tpu.memory_space<vmem>>, vector<1x1x128xf32>
    tpu.vector_store %arg2[%c0_9, %c0_10, %33], %32 {strides = array<i32>} : memref<1x1x128xf32, #tpu.memory_space<vmem>>, vector<1x1x128xf32>,
    %c1_i32 = arith.constant 1 : i32
    return
  }
  func.func @transform_0(%arg0: i32) -> (i32, i32) {
    %c0_i32 = arith.constant 0 : i32
    %c0_i32_0 = arith.constant 0 : i32
    return %arg0, %c0_i32 : i32, i32
  }
  func.func @transform_1(%arg0: i32) -> (i32, i32, i32) {
    %c0_i32 = arith.constant 0 : i32
    %c0_i32_0 = arith.constant 0 : i32
    %c0_i32_1 = arith.constant 0 : i32
    return %arg0, %c0_i32, %c0_i32_0 : i32, i32, i32
  }
}

</mosaic_0001>

<bundles_post_ra>
// kernel: tpu_custom_call.1
= control target key start
LH: loop header
LB: loop body
LE: loop exit
PB: predicated region body
PF: predicated region fallthrough
CT: control target
= control target key end

     0   :  { %s218_s0 = inlined_call_operand.vmem [shape: f32[128,11], index: 0, kind: input, shape index: {}]   ;;  %s219_s1 = inlined_call_operand.hbm [shape: f32[1,1,128], index: 1, kind: output, shape index: {}]  }
   0x1   :  { %v9_v0 = vld [vmem:[%s218_s0] sm:$0xff]  ;;  %v10_v1 = vld [vmem:[%s218_s0 + $0x8] sm:$0xff] }
   0x2   :  { %25 = vxpose.xlu0.b32.start [1/16] (narrow) %v9_v0, 16 }
   0x6   :  { %26 = vxpose.xlu0.b32.cont [2/16] (narrow) %v10_v1, 16 }
   0x7   :  { %6 = vsyncpa [#allocation3], 0  ;;  %v11_v2 = vld [vmem:[%s218_s0 + $0x10] sm:$0xff]  ;;  %v12_v3 = vld [vmem:[%s218_s0 + $0x18] sm:$0xff]  ;;  %v68_v16 = vlaneseq  ;;  %vm57_vm0 = vcmask 1047553   ;;  %vm59_vm1 = vcmask 1042432  }
   0x8   :  { %v13_v4 = vld [vmem:[%s218_s0 + $0x20] sm:$0xff]  ;;  %v14_v5 = vld [vmem:[%s218_s0 + $0x28] sm:$0xff]  ;;  %v15_v6 = vld [vmem:[%s218_s0 + $0x30] sm:$0xff]  ;;  %vm77_vm2 = vcmask 1040384  }
   0x9   :  { %v16_v7 = vld [vmem:[%s218_s0 + $0x38] sm:$0xff]  ;;  %v17_v8 = vld [vmem:[%s218_s0 + $0x40] sm:$0xff]  ;;  %v18_v9 = vld [vmem:[%s218_s0 + $0x48] sm:$0xff]  ;;  %v69_v18 = vshrl.u32 %v68_v16, 7 }
   0xa   :  { %27 = vxpose.xlu0.b32.cont [3/16] (narrow) %v11_v2, 16  ;;  %v19_v10 = vld [vmem:[%s218_s0 + $0x50] sm:$0xff]  ;;  %v20_v11 = vld [vmem:[%s218_s0 + $0x58] sm:$0xff]  ;;  %v21_v12 = vld [vmem:[%s218_s0 + $0x60] sm:$0xff] }
   0xb   :  { %v22_v13 = vld [vmem:[%s218_s0 + $0x68] sm:$0xff]  ;;  %v23_v14 = vld [vmem:[%s218_s0 + $0x70] sm:$0xff]  ;;  %v24_v15 = vld [vmem:[%s218_s0 + $0x78] sm:$0xff]  ;;  %v70_v23 = vadd.s32 8, %v69_v18  ;;  %v71_v26 = vcvt.s32.f32 %v69_v18  ;;  %s143_s0 = smov [#allocation2]  }
   0xc   :  { %s109_s9 = sshll.u32 %s143_s0, 4  ;;  %s110_s9 = int_to_ptr.vmem [resolvable:$true] %s109_s9 }
   0xd   :  { %v72_v27 = vcvt.s32.f32 %v70_v23  ;;  %v78_v30 = vrot.slane %v71_v26, 7  ;;  %s119_s10 = scalar_lea.vmem %s110_s9, 16  ;;  %s123_s11 = scalar_lea.vmem %s110_s9, 32 }
   0xe   :  { %28 = vxpose.xlu0.b32.cont [4/16] (narrow) %v12_v3, 16  ;;  %p120_p0 = scmp.ne.s32.totalorder %s110_s9, %s119_s10  ;;  %p124_p1 = scmp.lt.s32.totalorder %s110_s9, %s110_s9 }
   0xf   :  { %v79_v31 = vrot.slane %v72_v27, 7  ;;  %p125_p2 = scmp.lt.s32.totalorder %s123_s11, %s119_s10 }
  0x11   :  { %v80_v34 = vsel %vm77_vm2, %v78_v30, %v79_v31  ;;  %p126_p3 = por %p125_p2, %p124_p1 }
  0x12   :  { %29 = vxpose.xlu0.b32.cont [5/16] (narrow) %v13_v4, 16 }
  0x13   :  { %p127_p4 = pnand %p126_p3, %p120_p0 }
  0x16   :  { %30 = vxpose.xlu0.b32.cont [6/16] (narrow) %v14_v5, 16 }
  0x1a   :  { %31 = vxpose.xlu0.b32.cont [7/16] (narrow) %v15_v6, 16 }
  0x1e   :  { %32 = vxpose.xlu0.b32.cont [8/16] (narrow) %v16_v7, 16 }
  0x22   :  { %33 = vxpose.xlu0.b32.cont [9/16] (narrow) %v17_v8, 16 }
  0x26   :  { %34 = vxpose.xlu0.b32.cont [10/16] (narrow) %v18_v9, 16 }
  0x2a   :  { %35 = vxpose.xlu0.b32.cont [11/16] (narrow) %v19_v10, 16 }
  0x2e   :  { %36 = vxpose.xlu0.b32.cont [12/16] (narrow) %v20_v11, 16 }
  0x32   :  { %37 = vxpose.xlu0.b32.cont [13/16] (narrow) %v21_v12, 16 }
  0x36   :  { %38 = vxpose.xlu0.b32.cont [14/16] (narrow) %v22_v13, 16 }
  0x3a   :  { %39 = vxpose.xlu0.b32.cont [15/16] (narrow) %v23_v14, 16 }
  0x3e   :  { %40 = vxpose.xlu0.b32.end [16/16] (narrow) %v24_v15, 16 }
  0x82   :  { %v41_v17 = vpop.trf.xlu0 }
  0x83   :  { %v58_v20 = vsel %vm57_vm0, %v41_v17, -inf  ;;  %v96_v43 = vmul.f32 2.0, %v41_v17 }
  0x85   :  { %v117_v46 = vadd.f32 -1.0, %v96_v43 }
  0x86   :  { %v42_v19 = vpop.trf.xlu0 }
  0x87   :  { %v60_v21 = vsel %vm59_vm1, %v42_v19, -inf  ;;  %v98_v49 = vmul.f32 0.1, %v117_v46 }
  0x88   :  { %v61_v22 = vmax.f32 %v58_v20, %v60_v21 }
  0x8a   :  { %v62_v24 = vrot.slane %v61_v22, 4 }
  0x8c   :  { %v63_v25 = vmax.f32 %v61_v22, %v62_v24 }
  0x8e   :  { %v64_v28 = vrot.slane %v63_v25, 2 }
  0x90   :  { %v65_v29 = vmax.f32 %v63_v25, %v64_v28 }
  0x92   :  { %v66_v32 = vrot.slane %v65_v29, 1 }
  0x94   :  { %v67_v33 = vmax.f32 %v65_v29, %v66_v32 }
  0x96   :  { %vm73_vm3 = vcmp.eq.f32.partialorder %v41_v17, %v67_v33  ;;  %vm74_vm4 = vcmp.eq.f32.partialorder %v42_v19, %v67_v33 }
  0x97   :  { %v83_v35 = vsel %vm73_vm3, %v78_v30, 10.0  ;;  %v84_v36 = vsel %vm74_vm4, %v80_v34, 10.0 }
  0x98   :  { %v85_v37 = vsel %vm57_vm0, %v83_v35, inf  ;;  %v86_v38 = vsel %vm59_vm1, %v84_v36, inf }
  0x99   :  { %v87_v39 = vmin.f32 %v85_v37, %v86_v38 }
  0x9b   :  { %v88_v40 = vrot.slane %v87_v39, 4 }
  0x9d   :  { %v89_v41 = vmin.f32 %v87_v39, %v88_v40 }
  0x9f   :  { %v90_v42 = vrot.slane %v89_v41, 2 }
  0xa1   :  { %v91_v44 = vmin.f32 %v89_v41, %v90_v42 }
  0xa3   :  { %v92_v45 = vrot.slane %v91_v44, 1 }
  0xa5   :  { %v93_v47 = vmin.f32 %v91_v44, %v92_v45 }
  0xa7   :  { %v94_v48 = vmul.f32 0.1, %v93_v47 }
  0xa9   :  { %v95_v50 = vadd.f32 0.05, %v94_v48 }
  0xab   :  { %v99_v51 = vadd.f32 %v98_v49, %v95_v50 }
  0xad   :  { %v100_v52 = vmax.f32 %v99_v51, 0.0 }
  0xaf   :  { %v101_v53 = vmin.f32 %v100_v52, 1.0 }
  0xb1   :  { %102 = vst [vmem:[#allocation2] sm:$0x1] %v101_v53 }
  0xb2   :  { %130 = shalt.err (!%p127_p4)
}
  0xb3   :  { %s131_s14 = scalar_lea.hbm %s219_s1, 16 }
  0xb4   :  { %p132_p5 = scmp.ne.s32.totalorder %s219_s1, %s131_s14  ;;  %p135_p6 = scmp.lt.u32.totalorder %s131_s14, %s219_s1 }
  0xb6   :  { %p137_p7 = pnand %p135_p6, %p132_p5 }
  0xb8   :  { %140 = shalt.err (!%p137_p7)
}
  0xb9   :  { %112 = dma.vmem_to_hbm [thread:$0]  %s110_s9, 16, %s219_s1, [#allocation3]  }
  0xba   :  { %141 = dma.done.wait [#allocation3], 16  }
  0xbb   :  { %142 = vsyncadd [#allocation3], 4294967280 }
  0xbc   :  { %116 = vsyncpa [#allocation3], 1 }

// kernel: tpu_custom_call.1
= control target key start
LH: loop header
LB: loop body
LE: loop exit
PB: predicated region body
PF: predicated region fallthrough
CT: control target
= control target key end

     0   :  { %s218_s0 = inlined_call_operand.vmem [shape: f32[128,11], index: 0, kind: input, shape index: {}]   ;;  %s219_s1 = inlined_call_operand.hbm [shape: f32[1,1,128], index: 1, kind: output, shape index: {}]  }
   0x1   :  { %v9_v0 = vld [vmem:[%s218_s0] sm:$0xff]  ;;  %v10_v1 = vld [vmem:[%s218_s0 + $0x8] sm:$0xff] }
   0x2   :  { %25 = vxpose.xlu0.b32.start [1/16] (narrow) %v9_v0, 16 }
   0x6   :  { %26 = vxpose.xlu0.b32.cont [2/16] (narrow) %v10_v1, 16 }
   0x7   :  { %6 = vsyncpa [#allocation3], 0  ;;  %v11_v2 = vld [vmem:[%s218_s0 + $0x10] sm:$0xff]  ;;  %v12_v3 = vld [vmem:[%s218_s0 + $0x18] sm:$0xff]  ;;  %v68_v16 = vlaneseq  ;;  %vm57_vm0 = vcmask 1047553   ;;  %vm59_vm1 = vcmask 1042432  }
   0x8   :  { %v13_v4 = vld [vmem:[%s218_s0 + $0x20] sm:$0xff]  ;;  %v14_v5 = vld [vmem:[%s218_s0 + $0x28] sm:$0xff]  ;;  %v15_v6 = vld [vmem:[%s218_s0 + $0x30] sm:$0xff]  ;;  %vm77_vm2 = vcmask 1040384  }
   0x9   :  { %v16_v7 = vld [vmem:[%s218_s0 + $0x38] sm:$0xff]  ;;  %v17_v8 = vld [vmem:[%s218_s0 + $0x40] sm:$0xff]  ;;  %v18_v9 = vld [vmem:[%s218_s0 + $0x48] sm:$0xff]  ;;  %v69_v18 = vshrl.u32 %v68_v16, 7 }
   0xa   :  { %27 = vxpose.xlu0.b32.cont [3/16] (narrow) %v11_v2, 16  ;;  %v19_v10 = vld [vmem:[%s218_s0 + $0x50] sm:$0xff]  ;;  %v20_v11 = vld [vmem:[%s218_s0 + $0x58] sm:$0xff]  ;;  %v21_v12 = vld [vmem:[%s218_s0 + $0x60] sm:$0xff] }
   0xb   :  { %v22_v13 = vld [vmem:[%s218_s0 + $0x68] sm:$0xff]  ;;  %v23_v14 = vld [vmem:[%s218_s0 + $0x70] sm:$0xff]  ;;  %v24_v15 = vld [vmem:[%s218_s0 + $0x78] sm:$0xff]  ;;  %v70_v23 = vadd.s32 8, %v69_v18  ;;  %v71_v26 = vcvt.s32.f32 %v69_v18  ;;  %s143_s0 = smov [#allocation2]  }
   0xc   :  { %s109_s9 = sshll.u32 %s143_s0, 4  ;;  %s110_s9 = int_to_ptr.vmem [resolvable:$true] %s109_s9 }
   0xd   :  { %v72_v27 = vcvt.s32.f32 %v70_v23  ;;  %v78_v30 = vrot.slane %v71_v26, 7  ;;  %s119_s10 = scalar_lea.vmem %s110_s9, 16  ;;  %s123_s11 = scalar_lea.vmem %s110_s9, 32 }
   0xe   :  { %28 = vxpose.xlu0.b32.cont [4/16] (narrow) %v12_v3, 16  ;;  %p120_p0 = scmp.ne.s32.totalorder %s110_s9, %s119_s10  ;;  %p124_p1 = scmp.lt.s32.totalorder %s110_s9, %s110_s9 }
   0xf   :  { %v79_v31 = vrot.slane %v72_v27, 7  ;;  %p125_p2 = scmp.lt.s32.totalorder %s123_s11, %s119_s10 }
  0x11   :  { %v80_v34 = vsel %vm77_vm2, %v78_v30, %v79_v31  ;;  %p126_p3 = por %p125_p2, %p124_p1 }
  0x12   :  { %29 = vxpose.xlu0.b32.cont [5/16] (narrow) %v13_v4, 16 }
  0x13   :  { %p127_p4 = pnand %p126_p3, %p120_p0 }
  0x16   :  { %30 = vxpose.xlu0.b32.cont [6/16] (narrow) %v14_v5, 16 }
  0x1a   :  { %31 = vxpose.xlu0.b32.cont [7/16] (narrow) %v15_v6, 16 }
  0x1e   :  { %32 = vxpose.xlu0.b32.cont [8/16] (narrow) %v16_v7, 16 }
  0x22   :  { %33 = vxpose.xlu0.b32.cont [9/16] (narrow) %v17_v8, 16 }
  0x26   :  { %34 = vxpose.xlu0.b32.cont [10/16] (narrow) %v18_v9, 16 }
  0x2a   :  { %35 = vxpose.xlu0.b32.cont [11/16] (narrow) %v19_v10, 16 }
  0x2e   :  { %36 = vxpose.xlu0.b32.cont [12/16] (narrow) %v20_v11, 16 }
  0x32   :  { %37 = vxpose.xlu0.b32.cont [13/16] (narrow) %v21_v12, 16 }
  0x36   :  { %38 = vxpose.xlu0.b32.cont [14/16] (narrow) %v22_v13, 16 }
  0x3a   :  { %39 = vxpose.xlu0.b32.cont [15/16] (narrow) %v23_v14, 16 }
  0x3e   :  { %40 = vxpose.xlu0.b32.end [16/16] (narrow) %v24_v15, 16 }
  0x82   :  { %v41_v17 = vpop.trf.xlu0 }
  0x83   :  { %v58_v20 = vsel %vm57_vm0, %v41_v17, -inf  ;;  %v96_v43 = vmul.f32 2.0, %v41_v17 }
  0x85   :  { %v117_v46 = vadd.f32 -1.0, %v96_v43 }
  0x86   :  { %v42_v19 = vpop.trf.xlu0 }
  0x87   :  { %v60_v21 = vsel %vm59_vm1, %v42_v19, -inf  ;;  %v98_v49 = vmul.f32 0.1, %v117_v46 }
  0x88   :  { %v61_v22 = vmax.f32 %v58_v20, %v60_v21 }
  0x8a   :  { %v62_v24 = vrot.slane %v61_v22, 4 }
  0x8c   :  { %v63_v25 = vmax.f32 %v61_v22, %v62_v24 }
  0x8e   :  { %v64_v28 = vrot.slane %v63_v25, 2 }
  0x90   :  { %v65_v29 = vmax.f32 %v63_v25, %v64_v28 }
  0x92   :  { %v66_v32 = vrot.slane %v65_v29, 1 }
  0x94   :  { %v67_v33 = vmax.f32 %v65_v29, %v66_v32 }
  0x96   :  { %vm73_vm3 = vcmp.eq.f32.partialorder %v41_v17, %v67_v33  ;;  %vm74_vm4 = vcmp.eq.f32.partialorder %v42_v19, %v67_v33 }
  0x97   :  { %v83_v35 = vsel %vm73_vm3, %v78_v30, 10.0  ;;  %v84_v36 = vsel %vm74_vm4, %v80_v34, 10.0 }
  0x98   :  { %v85_v37 = vsel %vm57_vm0, %v83_v35, inf  ;;  %v86_v38 = vsel %vm59_vm1, %v84_v36, inf }
  0x99   :  { %v87_v39 = vmin.f32 %v85_v37, %v86_v38 }
  0x9b   :  { %v88_v40 = vrot.slane %v87_v39, 4 }
  0x9d   :  { %v89_v41 = vmin.f32 %v87_v39, %v88_v40 }
  0x9f   :  { %v90_v42 = vrot.slane %v89_v41, 2 }
  0xa1   :  { %v91_v44 = vmin.f32 %v89_v41, %v90_v42 }
  0xa3   :  { %v92_v45 = vrot.slane %v91_v44, 1 }
  0xa5   :  { %v93_v47 = vmin.f32 %v91_v44, %v92_v45 }
  0xa7   :  { %v94_v48 = vmul.f32 0.1, %v93_v47 }
  0xa9   :  { %v95_v50 = vadd.f32 0.05, %v94_v48 }
  0xab   :  { %v99_v51 = vadd.f32 %v98_v49, %v95_v50 }
  0xad   :  { %v100_v52 = vmax.f32 %v99_v51, 0.0 }
  0xaf   :  { %v101_v53 = vmin.f32 %v100_v52, 1.0 }
  0xb1   :  { %102 = vst [vmem:[#allocation2] sm:$0x1] %v101_v53 }
  0xb2   :  { %130 = shalt.err (!%p127_p4)
}
  0xb3   :  { %s131_s14 = scalar_lea.hbm %s219_s1, 16 }
  0xb4   :  { %p132_p5 = scmp.ne.s32.totalorder %s219_s1, %s131_s14  ;;  %p135_p6 = scmp.lt.u32.totalorder %s131_s14, %s219_s1 }
  0xb6   :  { %p137_p7 = pnand %p135_p6, %p132_p5 }
  0xb8   :  { %140 = shalt.err (!%p137_p7)
}
  0xb9   :  { %112 = dma.vmem_to_hbm [thread:$0]  %s110_s9, 16, %s219_s1, [#allocation3]  }
  0xba   :  { %141 = dma.done.wait [#allocation3], 16  }
  0xbb   :  { %142 = vsyncadd [#allocation3], 4294967280 }
  0xbc   :  { %116 = vsyncpa [#allocation3], 1 }

</bundles_post_ra>
